<compile_context>
chip_gen: v6e
topology: v6e:2x2x1
jax: 0.10.0
libtpu: 0.0.40
codegen_flags: <defaults>
</compile_context>

<pallas_src>
import functools

import numpy as np
import jax
import jax.numpy as jnp
from jax.experimental import pallas as pl
from jax.experimental.pallas import tpu as pltpu


def _build_avg_matrix(seq_len, kernel_size):
    """(L, L) banded averaging matrix with edge replication folded in."""
    pad = (kernel_size - 1) // 2
    A = np.zeros((seq_len, seq_len), np.float32)
    for t in range(seq_len):
        for k in range(kernel_size):
            s = min(max(t + k - pad, 0), seq_len - 1)   # edge replication == clamp
            A[t, s] += 1.0
    return A * (1.0 / kernel_size)


def _vmem_capacity_bytes():
    """Physical VMEM per core for the current generation (fallback: v7x's 64 MiB)."""
    try:
        return int(pltpu.get_tpu_info().vmem_capacity_bytes)
    except Exception:
        return 64 * 1024 * 1024


def _pick_tiles(B, L, C, x_itemsize, a_itemsize, vmem_budget):
    """Choose (time_tile, channel_tile) against the actual VMEM residents."""
    # --- time tile: keep the whole (L, L) matrix resident when it fits -------
    tl = L
    if 2 * L * L * a_itemsize > vmem_budget // 2:
        for cand in (512, 256, 128, 64, 32, 16, 8):
            if L % cand == 0 and 2 * cand * L * a_itemsize <= vmem_budget // 2:
                tl = cand
                break

    def fits(tl_, tc_):
        a_b = 2 * tl_ * L * a_itemsize           # A rows, double-buffered
        x_b = 2 * L * tc_ * x_itemsize           # x (full time extent), double-buffered
        o_b = 2 * 2 * tl_ * tc_ * x_itemsize     # res + mean, double-buffered
        return a_b + x_b + o_b <= vmem_budget

    # --- channel tile: lane-dense (multiple of 128), as big as budget allows --
    if C % 128 == 0:
        tc = 128
        for cand in (4096, 2048, 1024, 512, 256, 128):
            if C % cand == 0 and fits(tl, cand):
                tc = cand
                break
    else:
        tc = C   # block == full dim is always legal (masked stores; see TODO above)

    # --- guarantee >= 2 grid steps so both v7x TensorCores get work ----------
    if B * (C // tc) * (L // tl) == 1:
        if C % 256 == 0:
            tc = C // 2
        elif L % 16 == 0:
            tl = L // 2
    return tl, tc


def _decomp_kernel(a_ref, x_ref, res_ref, mean_ref, *, tl):
    # a_ref   : (tl, L)    averaging-matrix row block
    # x_ref   : (1, L, tc) input block (full time extent; resident across the t axis)
    # res_ref : (1, tl, tc) output block, res = x - moving_mean
    # mean_ref: (1, tl, tc) output block, moving_mean
    L = x_ref.shape[1]
    x_full = x_ref[0]                                            # (L, tc)

    if a_ref.dtype == jnp.bfloat16:
        # Native single-pass bf16 MXU, f32 accumulation.
        mean = jnp.dot(a_ref[...], x_full,
                       preferred_element_type=jnp.float32)        # (tl, tc)
    else:
        # Manual bf16x3: 3 bf16 passes instead of 6 f32-emulation passes.
        a = a_ref[...].astype(jnp.float32)
        xf = x_full.astype(jnp.float32)
        a_hi = a.astype(jnp.bfloat16)
        a_lo = (a - a_hi.astype(jnp.float32)).astype(jnp.bfloat16)
        x_hi = xf.astype(jnp.bfloat16)
        x_lo = (xf - x_hi.astype(jnp.float32)).astype(jnp.bfloat16)
        mean = (jnp.dot(a_hi, x_hi, preferred_element_type=jnp.float32)
                + jnp.dot(a_hi, x_lo, preferred_element_type=jnp.float32)
                + jnp.dot(a_lo, x_hi, preferred_element_type=jnp.float32))

    if tl == L:
        x_tile = x_full
    else:
        t = pl.program_id(2)
        off = pl.multiple_of(t * tl, tl)
        x_tile = x_ref[0, pl.ds(off, tl), :]

    mean_ref[0] = mean.astype(mean_ref.dtype)
    res_ref[0] = (x_tile.astype(jnp.float32) - mean).astype(res_ref.dtype)


@functools.partial(jax.jit, static_argnames=("kernel_size", "time_tile", "channel_tile"))
def series_decomp(x, kernel_size, *, time_tile=None, channel_tile=None):
    """x: (B, L, C).  Returns (res, moving_mean), both (B, L, C)."""
    B, L, C = x.shape
    if kernel_size % 2 != 1:
        # stride=1 series_decomp requires L_out == L, i.e. odd kernel_size
        # (the PyTorch module would fail on the residual subtraction otherwise).
        raise ValueError("series_decomp requires an odd kernel_size")

    a_dtype = jnp.bfloat16 if x.dtype == jnp.bfloat16 else jnp.float32
    x_itemsize = jnp.dtype(x.dtype).itemsize
    a_itemsize = jnp.dtype(a_dtype).itemsize

    vmem_cap = _vmem_capacity_bytes()
    tl, tc = _pick_tiles(B, L, C, x_itemsize, a_itemsize,
                         vmem_budget=int(0.55 * vmem_cap))
    if time_tile is not None:
        tl = time_tile
    if channel_tile is not None:
        tc = channel_tile
    if L % tl != 0 or C % tc != 0:
        raise ValueError(f"tiles ({tl},{tc}) must divide (L,C)=({L},{C})")

    A = jnp.asarray(_build_avg_matrix(L, kernel_size), dtype=a_dtype)

    grid = (B, C // tc, L // tl)
    kernel = functools.partial(_decomp_kernel, tl=tl)

    res, mean = pl.pallas_call(
        kernel,
        out_shape=(jax.ShapeDtypeStruct((B, L, C), x.dtype),
                   jax.ShapeDtypeStruct((B, L, C), x.dtype)),
        grid_spec=pltpu.PrefetchScalarGridSpec(
            num_scalar_prefetch=0,
            grid=grid,
            in_specs=[
                pl.BlockSpec((tl, L), lambda b, c, t: (t, 0)),        # A row block
                pl.BlockSpec((1, L, tc), lambda b, c, t: (b, 0, c)),  # x (full L; reused over t)
            ],
            out_specs=[
                pl.BlockSpec((1, tl, tc), lambda b, c, t: (b, t, c)),  # res
                pl.BlockSpec((1, tl, tc), lambda b, c, t: (b, t, c)),  # moving_mean
            ],
        ),
        compiler_params=pltpu.CompilerParams(
            dimension_semantics=("parallel", "parallel", "parallel"),
            vmem_limit_bytes=int(0.9 * vmem_cap),
        ),
    )(A, x)
    return res, mean


def _reference_series_decomp(x, kernel_size):
    """Pure-JAX reference matching the PyTorch module (f32 math)."""
    pad = (kernel_size - 1) // 2
    xf = x.astype(jnp.float32)
    if pad > 0:
        front = jnp.repeat(xf[:, :1, :], pad, axis=1)
        end = jnp.repeat(xf[:, -1:, :], pad, axis=1)
        xp = jnp.concatenate([front, xf, end], axis=1)
    else:
        xp = xf
    L = x.shape[1]
    cs = jnp.cumsum(xp, axis=1)
    cs = jnp.concatenate([jnp.zeros_like(cs[:, :1, :]), cs], axis=1)
    mean = (cs[:, kernel_size:kernel_size + L, :] - cs[:, 0:L, :]) / kernel_size
    return xf - mean, mean


if __name__ == "__main__":
    cases = [
        # B, L, C, K, dtype, tol, extra-kwargs
        (2, 32, 128, 25, jnp.float32, 1e-4, {}),              # lane-dense channels
        (2, 16, 32, 5, jnp.float32, 1e-4, {}),                # C < 128 fallback path
        (1, 24, 32, 1, jnp.float32, 1e-4, {}),                # kernel_size=1 edge case
        (1, 32, 256, 25, jnp.float32, 1e-4, {}),              # grid split for dual-TC chips
        (2, 64, 128, 25, jnp.float32, 1e-4, {"time_tile": 16}),  # time-tiled A path
        (2, 32, 128, 25, jnp.bfloat16, 3e-2, {}),             # native bf16 MXU path
    ]
    key = jax.random.PRNGKey(0)
    keys = jax.random.split(key, len(cases))
    for i, (B, L, C, K, dtype, tol, kwargs) in enumerate(cases):
        x = jax.random.normal(keys[i], (B, L, C), dtype=jnp.float32).astype(dtype)
        res, mean = series_decomp(x, K, **kwargs)
        jax.block_until_ready((res, mean))
        res_ref, mean_ref = _reference_series_decomp(x, K)
        assert mean.shape == mean_ref.shape, (mean.shape, mean_ref.shape)
        assert res.shape == res_ref.shape, (res.shape, res_ref.shape)
        assert jnp.allclose(mean.astype(jnp.float32), mean_ref, atol=tol, rtol=tol), \
            f"mean mismatch, case {i}"
        assert jnp.allclose(res.astype(jnp.float32), res_ref, atol=tol, rtol=tol), \
            f"res mismatch, case {i}"
    print("KERNEL_OK")
</pallas_src>

<mosaic_0001>
module attributes {stable_mosaic.version = 11 : i64} {
  func.func @_decomp_kernel(%arg0: i32, %arg1: i32, %arg2: i32, %arg3: memref<32x32xf32, #tpu.memory_space<vmem>>, %arg4: memref<1x32x128xf32, #tpu.memory_space<vmem>>, %arg5: memref<1x32x128xf32, #tpu.memory_space<vmem>>, %arg6: memref<1x32x128xf32, #tpu.memory_space<vmem>>) attributes {dimension_semantics = [#tpu.dimension_semantics<parallel>, #tpu.dimension_semantics<parallel>, #tpu.dimension_semantics<parallel>], iteration_bounds = array<i64: 2, 1, 1>, scalar_prefetch = 0 : i64, scratch_operands = 0 : i64, tpu.core_type = #tpu.core_type<tc>, window_params = [{transform_indices = @transform_0, window_bounds = array<i64: 32, 32>}, {transform_indices = @transform_1, window_bounds = array<i64: 1, 32, 128>}, {transform_indices = @transform_2, window_bounds = array<i64: 1, 32, 128>}, {transform_indices = @transform_3, window_bounds = array<i64: 1, 32, 128>}]} {
    %c0 = arith.constant 0 : index
    %c0_0 = arith.constant 0 : index
    %c0_1 = arith.constant 0 : index
    %0 = vector.load %arg4[%c0, %c0_0, %c0_1] : memref<1x32x128xf32, #tpu.memory_space<vmem>>, vector<1x32x128xf32>
    %1 = vector.shape_cast %0 : vector<1x32x128xf32> to vector<32x128xf32>
    %c0_2 = arith.constant 0 : index
    %c0_3 = arith.constant 0 : index
    %2 = vector.load %arg3[%c0_2, %c0_3] : memref<32x32xf32, #tpu.memory_space<vmem>>, vector<32x32xf32>
    %3 = arith.truncf %2 : vector<32x32xf32> to vector<32x32xbf16>
    %4 = arith.extf %3 : vector<32x32xbf16> to vector<32x32xf32>
    %5 = arith.subf %2, %4 : vector<32x32xf32>
    %6 = arith.truncf %5 : vector<32x32xf32> to vector<32x32xbf16>
    %7 = arith.truncf %1 : vector<32x128xf32> to vector<32x128xbf16>
    %8 = arith.extf %7 : vector<32x128xbf16> to vector<32x128xf32>
    %9 = arith.subf %1, %8 : vector<32x128xf32>
    %10 = arith.truncf %9 : vector<32x128xf32> to vector<32x128xbf16>
    %cst = arith.constant dense<0.000000e+00> : vector<32x128xf32>
    %11 = tpu.matmul %3, %7, %cst {dimension_numbers = #tpu.dot_dimension_numbers<[1], [0], [0], [1], [0, 0, 1, 1], [], []>} : vector<32x32xbf16>, vector<32x128xbf16>, vector<32x128xf32> -> vector<32x128xf32>
    %cst_4 = arith.constant dense<0.000000e+00> : vector<32x128xf32>
    %12 = tpu.matmul %3, %10, %cst_4 {dimension_numbers = #tpu.dot_dimension_numbers<[1], [0], [0], [1], [0, 0, 1, 1], [], []>} : vector<32x32xbf16>, vector<32x128xbf16>, vector<32x128xf32> -> vector<32x128xf32>
    %13 = arith.addf %11, %12 : vector<32x128xf32>
    %cst_5 = arith.constant dense<0.000000e+00> : vector<32x128xf32>
    %14 = tpu.matmul %6, %7, %cst_5 {dimension_numbers = #tpu.dot_dimension_numbers<[1], [0], [0], [1], [0, 0, 1, 1], [], []>} : vector<32x32xbf16>, vector<32x128xbf16>, vector<32x128xf32> -> vector<32x128xf32>
    %15 = arith.addf %13, %14 : vector<32x128xf32>
    %c0_6 = arith.constant 0 : index
    %c0_7 = arith.constant 0 : index
    %c0_8 = arith.constant 0 : index
    %16 = vector.load %arg6[%c0_6, %c0_7, %c0_8] : memref<1x32x128xf32, #tpu.memory_space<vmem>>, vector<1x32x128xf32>
    %17 = vector.shape_cast %16 : vector<1x32x128xf32> to vector<32x128xf32>
    %18 = vector.shape_cast %15 : vector<32x128xf32> to vector<1x32x128xf32>
    tpu.vector_store %arg6[%c0_6, %c0_7, %c0_8], %18 {strides = array<i32>} : memref<1x32x128xf32, #tpu.memory_space<vmem>>, vector<1x32x128xf32>,
    %19 = arith.subf %1, %15 : vector<32x128xf32>
    %c0_9 = arith.constant 0 : index
    %c0_10 = arith.constant 0 : index
    %c0_11 = arith.constant 0 : index
    %20 = vector.load %arg5[%c0_9, %c0_10, %c0_11] : memref<1x32x128xf32, #tpu.memory_space<vmem>>, vector<1x32x128xf32>
    %21 = vector.shape_cast %20 : vector<1x32x128xf32> to vector<32x128xf32>
    %22 = vector.shape_cast %19 : vector<32x128xf32> to vector<1x32x128xf32>
    tpu.vector_store %arg5[%c0_9, %c0_10, %c0_11], %22 {strides = array<i32>} : memref<1x32x128xf32, #tpu.memory_space<vmem>>, vector<1x32x128xf32>,
    return
  }
  func.func @transform_0(%arg0: i32, %arg1: i32, %arg2: i32) -> (i32, i32) {
    %c0_i32 = arith.constant 0 : i32
    %c0_i32_0 = arith.constant 0 : i32
    return %arg2, %c0_i32 : i32, i32
  }
  func.func @transform_1(%arg0: i32, %arg1: i32, %arg2: i32) -> (i32, i32, i32) {
    %c0_i32 = arith.constant 0 : i32
    %c0_i32_0 = arith.constant 0 : i32
    return %arg0, %c0_i32, %arg1 : i32, i32, i32
  }
  func.func @transform_2(%arg0: i32, %arg1: i32, %arg2: i32) -> (i32, i32, i32) {
    %c0_i32 = arith.constant 0 : i32
    return %arg0, %arg2, %arg1 : i32, i32, i32
  }
  func.func @transform_3(%arg0: i32, %arg1: i32, %arg2: i32) -> (i32, i32, i32) {
    %c0_i32 = arith.constant 0 : i32
    return %arg0, %arg2, %arg1 : i32, i32, i32
  }
}

</mosaic_0001>

<bundles_post_ra>
// kernel: series_decomp.1
= control target key start
LH: loop header
LB: loop body
LE: loop exit
PB: predicated region body
PF: predicated region fallthrough
CT: control target
= control target key end

     0   :  { %9 = vsyncpa [#allocation3], 0  ;;  %s1251_s0 = inlined_call_operand.hbm [shape: f32[32,32], index: 0, kind: input, shape index: {}]   ;;  %s1252_s1 = inlined_call_operand.hbm [shape: f32[2,32,128], index: 1, kind: input, shape index: {}]   ;;  %s1253_s2 = inlined_call_operand.hbm [shape: f32[2,32,128], index: 2, kind: output, shape index: {0}]   ;;  %s1254_s3 = inlined_call_operand.hbm [shape: f32[2,32,128], index: 3, kind: output, shape index: {1}]  }
   0x1   :  { %10 = vsyncpa [#allocation6], 0 }
   0x2   :  { %12 = vsyncpa [#allocation6 + $0x1], 0 }
   0x3   :  { %13 = vsyncpa [#allocation4], 0 }
   0x4   :  { %15 = vsyncpa [#allocation4 + $0x1], 0 }
   0x5   :  { %16 = vsyncpa [#allocation9], 0 }
   0x6   :  { %18 = vsyncpa [#allocation9 + $0x1], 0  ;;  %s992_s12 = smov 0   ;;  %s994_s13 = smov 0  }
   0x7   :  { %s996_s14 = smov 0   ;;  %s998_s15 = smov 0  }
   0x8   :  { %s1000_s16 = smov 0   ;;  %s1002_s17 = smov 0  }
   0x9 LB: > { %s646_s18 = sadd.s32 4294967295, %s962_s17   ;;  %s647_s19 = sadd.s32 4294967294, %s962_s17   ;;  %s962_s17 = sphi %s1002_s17, %s24_s17   ;;  %s958_s16 = sphi %s1000_s16, %s1276_s16   ;;  %s954_s15 = sphi %s998_s15, %s1275_s15   ;;  %s950_s14 = sphi %s996_s14, %s1274_s14   ;;  %s946_s13 = sphi %s994_s13, %s1273_s13   ;;  %s942_s12 = sphi %s992_s12, %s1272_s12  }
   0xa   : > { %p91_p0 = scmp.ne.s32.totalorder %s946_s13, %s942_s12  ;;  %p1026_p1 = scmp.eq.s32.totalorder %s646_s18, 0 }
   0xb   : > { %p1030_p2 = scmp.eq.s32.totalorder %s646_s18, 1  ;;  %p125_p3 = scmp.eq.s32.totalorder %s647_s19, 1 }
   0xc   : > { %p1036_p4 = por %p1026_p1, %p91_p0  ;;  %p648_p5 = scmp.ge.s32.totalorder %s962_s17, 1 }
   0xd   : > { %p1041_p6 = por %p125_p3, %p91_p0  ;;  %p162_p7 = scmp.lt.s32.totalorder %s962_s17, 3 }
   0xe   : > { %s1260_s22 = scalar_select %p1036_p4, 1, 0 }
   0xf   : > { %s1261_s23 = scalar_select %p1041_p6, 1, 0 }
  0x10   : > { %p1046_p8 = pnand %p648_p5, %p162_p7  ;;  %s964_s25 = smov [#allocation2]  }
  0x11   : > { %s177_s26 = sshll.u32 %s964_s25, 4  ;;  %s43_s28 = sadd.s32 1, %s958_s16  ;;  %s178_s26 = int_to_ptr.vmem [resolvable:$true] %s177_s26 }
  0x12   : > { %p722_p9 = pneg %p1046_p8  ;;  %s805_s29 = scalar_lea.vmem %s178_s26, 512 }
  0x13   : > { %p806_p13 = scmp.ne.s32.totalorder %s178_s26, %s805_s29  ;;  %p813_p5 = scmp.lt.s32.totalorder %s178_s26, %s178_s26 }
  0x14   : > { %p1055_p11 = pnand %p722_p9, %p1026_p1  ;;  %p814_p7 = scmp.lt.s32.totalorder %s805_s29, %s805_s29 }
  0x16   : > { %p796_p12 = pneg %p1055_p11  ;;  %p815_p6 = por %p814_p7, %p813_p5 }
  0x18   : > { %p808_p0 = pnand %p806_p13, %p796_p12 }
  0x1a   : > { %p809_p3 = pneg %p808_p0 }
  0x1c   : > { %p816_p4 = pnand %p815_p6, %p809_p3 }
  0x1e   : > { %819 = shalt.err (!%p816_p4)
}
  0x1f   : > { %s1256_s30 = smov 128   ;;  %s1257_s4 = smov 8  }
  0x20   : > { %725 = dma.hbm_to_vmem [thread:$0]  (!%p1055_p11), %s1251_s0, 512, %s178_s26, [#allocation3], %s1256_s30, %s1256_s30, %s1257_s4  }
  0x21   : > { %p45_p4 = scmp.ge.s32.totalorder %s43_s28, 2  ;;  %s78_s7 = sadd.s32 1, %s950_s14 }
  0x22   : > { %p85_p6 = scmp.ne.s32.totalorder %s950_s14, %s946_s13  ;;  %p86_p9 = scmp.eq.s32.totalorder %s962_s17, 0 }
  0x23   : > { %s1278_s28 = smov (%p45_p4, %s43_s28), 0  ;;  %p738_p0 = scmp.lt.s32.totalorder %s962_s17, 2 }
  0x24   : > { %p1076_p12 = por %p86_p9, %p85_p6  ;;  %p1082_p13 = por %p1030_p2, %p85_p6 }
  0x25   : > { %s73_s10 = ssub.s32 %s958_s16, %s1278_s28  ;;  %s191_s11 = sand.u32 1, %s950_s14  }
  0x26   : > { %p76_p11 = scmp.eq.s32.totalorder %s73_s10, 0  ;;  %s651_s18 = sshll.u32 %s191_s11, 5 }
  0x27   : > { %s673_s25 = sshll.u32 %s958_s16, 9  ;;  %s195_s5 = scalar_lea.vmem [#allocation5], %s651_s18 }
  0x28   : > { %s1091_s19 = scalar_select %p76_p11, %s950_s14, %s78_s7  }
  0x29   : > { %s202_s29 = scalar_lea.hbm %s1252_s1, %s673_s25  ;;  %s203_s6 = sshll.u32 %s195_s5, 4  ;;  %s204_s6 = int_to_ptr.vmem [resolvable:$true] %s203_s6 }
  0x2a   : > { %p1099_p2 = pnand %p738_p0, %p1076_p12  ;;  %s192_s30 = scalar_lea.sflag [#allocation6], %s191_s11 }
  0x2b   : > { %s833_s10 = scalar_lea.vmem %s204_s6, 512  ;;  %s967_s7 = smov [#allocation5]  }
  0x2c   : > { %p822_p3 = pneg %p1099_p2  ;;  %p834_p5 = scmp.ne.s32.totalorder %s204_s6, %s833_s10 }
  0x2d   : > { %s838_s4 = sshll.u32 %s967_s7, 4  ;;  %s839_s4 = int_to_ptr.vmem [resolvable:$false] %s838_s4 }
  0x2e   : > { %p836_p7 = pnand %p834_p5, %p822_p3  ;;  %s840_s25 = scalar_lea.vmem %s839_s4, 1024 }
  0x2f   : > { %p841_p6 = scmp.lt.s32.totalorder %s204_s6, %s839_s4  ;;  %p842_p9 = scmp.lt.s32.totalorder %s840_s25, %s833_s10 }
  0x30   : > { %p837_p4 = pneg %p836_p7 }
  0x31   : > { %p843_p11 = por %p842_p9, %p841_p6 }
  0x33   : > { %p844_p10 = pnand %p843_p11, %p837_p4 }
  0x35   : > { %847 = shalt.err (!%p844_p10)
}
  0x36   : > { %s1267_s8 = smov 8   ;;  %s1268_s18 = smov 128  }
  0x37   : > { %729 = dma.hbm_to_vmem [thread:$0]  (!%p1099_p2), %s202_s29, 512, %s204_s6, %s192_s30, %s1268_s18, %s1268_s18, %s1267_s8  }
  0x38   : > { %215 = sbr.rel (%p1046_p8) target bundleno = 328 (0x148), region = 28 }
  0x3d   : > { %925 = dma.done.wait (%p1026_p1), [#allocation3], 512  }
  0x3e   : > { %927 = vsyncadd (%p1026_p1), [#allocation3], 4294966784  ;;  %s1117_s4 = sand.u32 1, %s946_s13   ;;  %p1269_p10 = scmp.ne.s32.totalorder %s1260_s22, 0 }
  0x3f   : > { %s1120_s11 = sshll.u32 %s1117_s4, 5  ;;  %s222_s26 = scalar_lea.sflag [#allocation6], %s1117_s4 }
  0x40   : > { %s225_s30 = scalar_lea.vmem [#allocation5], %s1120_s11 }
  0x41   : > { %929 = dma.done.wait (%p1269_p10), %s222_s26, 512  }
  0x42   : > { %931 = vsyncadd (%p1269_p10), %s222_s26, 4294966784  ;;  %v1128_v0 = vld [vmem:[%s225_s30 + $0x10] sm:$0xff]  ;;  %v1130_v1 = vld [vmem:[%s225_s30 + $0x18] sm:$0xff]  ;;  %vm289_vm0 = vcmask 261120   ;;  %s252_s20 = scalar_lea.vmem [#allocation8], %s1120_s11  ;;  %s674_s24 = sshll.u32 %s954_s15, 9 }
  0x43   : > { %v1132_v2 = vld [vmem:[%s225_s30] sm:$0xff]  ;;  %v278_v3 = vpack.c.bf16 %v1130_v1, %v1128_v0  ;;  %v1136_v4 = vld [vmem:[%s225_s30 + $0x8] sm:$0xff]  ;;  %v263_v13 = vld [vmem:[#allocation2 + $0x10] sm:$0xff]  ;;  %s506_s22 = sshll.u32 %s252_s20, 4  ;;  %s1154_s27 = scalar_lea.vmem [#allocation7], %s1120_s11  ;;  %s1158_s22 = int_to_ptr.vmem [resolvable:$true] %s506_s22 }
  0x44   : > { %v261_v5 = vld [vmem:[#allocation2] sm:$0xff]  ;;  %v262_v6 = vld [vmem:[#allocation2 + $0x8] sm:$0xff]  ;;  %v277_v7 = vpack.c.bf16 %v1136_v4, %v1132_v2  ;;  %v264_v14 = vld [vmem:[#allocation2 + $0x18] sm:$0xff]  ;;  %s487_s29 = sshll.u32 %s1154_s27, 4  ;;  %s1166_s6 = scalar_lea.hbm %s1254_s3, %s674_s24  ;;  %s1168_s29 = int_to_ptr.vmem [resolvable:$true] %s487_s29 }
  0x45   : > { %v265_v8 = vpack.c.bf16 %v262_v6, %v261_v5  ;;  %v281_v9 = vunpack.c.l.bf16 %v278_v3  ;;  %v282_v10 = vunpack.c.h.bf16 %v278_v3  ;;  %696 = vmatprep.subr.bf16.mxu1 %v278_v3  ;;  %v266_v22 = vpack.c.bf16 %v264_v14, %v263_v13  ;;  %s1175_s7 = scalar_lea.hbm %s1253_s2, %s674_s24  ;;  %s471_s25 = scalar_lea.sflag [#allocation9], %s1117_s4 }
  0x46   : > { %697 = vmatpush3.bf16.msra.mxu1 %v278_v3  ;;  %v279_v11 = vunpack.c.l.bf16 %v277_v7  ;;  %v280_v12 = vunpack.c.h.bf16 %v277_v7  ;;  %s848_s8 = scalar_lea.vmem %s1158_s22, 512  ;;  %s968_s18 = smov [#allocation8]  }
  0x47   : > { %692 = vmatprep.mubr.msk.bf16.mxu0 %vm289_vm0, %v265_v8  ;;  %v285_v15 = vsub.f32 %v1128_v0, %v281_v9  ;;  %v286_v16 = vsub.f32 %v1130_v1, %v282_v10  ;;  %698 = vmatprep.subr.bf16.mxu1 %v277_v7  ;;  %v267_v19 = vunpack.c.l.bf16 %v265_v8  ;;  %v268_v20 = vunpack.c.h.bf16 %v265_v8  ;;  %p849_p1 = scmp.ne.s32.totalorder %s1158_s22, %s848_s8  ;;  %s852_s11 = sshll.u32 %s968_s18, 4  ;;  %s853_s11 = int_to_ptr.vmem [resolvable:$false] %s852_s11 }
  0x48   : > { %700 = vmatprep.mubr.msk.bf16.mxu1 %vm289_vm0, %v265_v8  ;;  %v283_v17 = vsub.f32 %v1132_v2, %v279_v11  ;;  %v284_v18 = vsub.f32 %v1136_v4, %v280_v12  ;;  %v269_v26 = vunpack.c.l.bf16 %v266_v22  ;;  %v270_v27 = vunpack.c.h.bf16 %v266_v22  ;;  %s854_s26 = scalar_lea.vmem %s853_s11, 1024  ;;  %p855_p0 = scmp.lt.s32.totalorder %s1158_s22, %s853_s11 }
  0x49   : > { %v288_v21 = vpack.c.bf16 %v286_v16, %v285_v15  ;;  %v271_v24 = vsub.f32 %v261_v5, %v267_v19  ;;  %v272_v25 = vsub.f32 %v262_v6, %v268_v20  ;;  %p850_p8 = pnand %p849_p1, %p1082_p13  ;;  %p856_p2 = scmp.lt.s32.totalorder %s854_s26, %s848_s8 }
  0x4a   : > { %v287_v23 = vpack.c.bf16 %v284_v18, %v283_v17  ;;  %699 = vmatpush3.bf16.msra.mxu1 %v277_v7  ;;  %v273_v29 = vsub.f32 %v263_v13, %v269_v26  ;;  %v274_v30 = vsub.f32 %v264_v14, %v270_v27 }
  0x4b   : > { %688 = vmatprep.subr.bf16.mxu0 %v288_v21  ;;  %v275_v28 = vpack.c.bf16 %v272_v25, %v271_v24  ;;  %p851_p12 = pneg %p850_p8  ;;  %p857_p3 = por %p856_p2, %p855_p0 }
  0x4c   : > { %689 = vmatpush3.bf16.msra.mxu0 %v288_v21  ;;  %v276_v31 = vpack.c.bf16 %v274_v30, %v273_v29 }
  0x4d   : > { %690 = vmatprep.subr.bf16.mxu0 %v287_v23  ;;  %701 = vmatmul.mubr.msk.bf16.vlgmr.msra.gmra.mxu1 %vm289_vm0, %v266_v22  ;;  %p858_p5 = pnand %p857_p3, %p851_p12 }
  0x50   : > { %691 = vmatpush3.bf16.msra.mxu0 %v287_v23 }
  0x51   : > { %704 = vmatprep.subr.bf16.mxu0 %v278_v3 }
  0x53   : > { %693 = vmatmul.mubr.msk.bf16.vlgmr.msra.gmra.mxu0 %vm289_vm0, %v266_v22 }
  0x54   : > { %705 = vmatpush3.bf16.msra.mxu0 %v278_v3  ;;  %708 = vmatprep.mubr.msk.bf16.mxu0 %vm289_vm0, %v275_v28 }
  0x55   : > { %706 = vmatprep.subr.bf16.mxu0 %v277_v7 }
  0x58   : > { %707 = vmatpush3.bf16.msra.mxu0 %v277_v7 }
  0x5b   : > { %709 = vmatmul.mubr.msk.bf16.vlgmr.msra.gmra.mxu0 %vm289_vm0, %v276_v31 }
 0x10d   : > { %v702_v32 = vpop.f32.mrf.mxu1 }
 0x10f   : > { %v379_v35 = vpop.f32.mrf.mxu1 }
 0x111   : > { %v703_v37 = vpop.f32.mrf.mxu1 }
 0x113   : > { %v694_v33 = vpop.f32.mrf.mxu0  ;;  %v382_v43 = vpop.f32.mrf.mxu1 }
 0x114   : > { %v388_v39 = vadd.f32 %v702_v32, %v694_v33 }
 0x115   : > { %v330_v34 = vpop.f32.mrf.mxu0 }
 0x116   : > { %v380_v41 = vadd.f32 %v379_v35, %v330_v34 }
 0x117   : > { %v695_v36 = vpop.f32.mrf.mxu0 }
 0x118   : > { %v391_v45 = vadd.f32 %v703_v37, %v695_v36 }
 0x119   : > { %v333_v38 = vpop.f32.mrf.mxu0 }
 0x11a   : > { %v383_v49 = vadd.f32 %v382_v43, %v333_v38 }
 0x11b   : > { %v710_v40 = vpop.f32.mrf.mxu0 }
 0x11c   : > { %v451_v42 = vadd.f32 %v710_v40, %v388_v39 }
 0x11d   : > { %v434_v44 = vpop.f32.mrf.mxu0 }
 0x11e   : > { %455 = vst [vmem:[%s252_s20 + $0x10] sm:$0xff] %v451_v42  ;;  %v459_v46 = vsub.f32 %v1128_v0, %v451_v42  ;;  %v449_v47 = vadd.f32 %v434_v44, %v380_v41 }
 0x11f   : > { %v711_v48 = vpop.f32.mrf.mxu0 }
 0x120   : > { %463 = vst [vmem:[%s1154_s27 + $0x10] sm:$0xff] %v459_v46  ;;  %453 = vst [vmem:[%s252_s20] sm:$0xff] %v449_v47  ;;  %v457_v50 = vsub.f32 %v1132_v2, %v449_v47  ;;  %v452_v51 = vadd.f32 %v711_v48, %v391_v45 }
 0x121   : > { %v437_v52 = vpop.f32.mrf.mxu0 }
 0x122   : > { %461 = vst [vmem:[%s1154_s27] sm:$0xff] %v457_v50  ;;  %456 = vst [vmem:[%s252_s20 + $0x18] sm:$0xff] %v452_v51  ;;  %v460_v53 = vsub.f32 %v1130_v1, %v452_v51  ;;  %v450_v54 = vadd.f32 %v437_v52, %v383_v49 }
 0x124   : > { %464 = vst [vmem:[%s1154_s27 + $0x18] sm:$0xff] %v460_v53  ;;  %454 = vst [vmem:[%s252_s20 + $0x8] sm:$0xff] %v450_v54  ;;  %v458_v55 = vsub.f32 %v1136_v4, %v450_v54 }
 0x125   : > { %861 = shalt.err (!%p858_p5)
}
 0x126   : > { %s862_s30 = scalar_lea.hbm %s1166_s6, 512  ;;  %s866_s15 = scalar_lea.hbm %s1254_s3, 1024 }
 0x127   : > { %p863_p7 = scmp.ne.s32.totalorder %s1166_s6, %s862_s30  ;;  %p867_p9 = scmp.lt.s32.totalorder %s1166_s6, %s1254_s3 }
 0x128   : > { %p868_p11 = scmp.lt.s32.totalorder %s866_s15, %s862_s30 }
 0x129   : > { %p864_p4 = pnand %p863_p7, %p1082_p13 }
 0x12a   : > { %p869_p10 = por %p868_p11, %p867_p9 }
 0x12b   : > { %p865_p6 = pneg %p864_p4 }
 0x12d   : > { %p870_p1 = pnand %p869_p10, %p865_p6 }
 0x12f   : > { %873 = shalt.err (!%p870_p1)
}
 0x130   : > { %s969_s10 = smov 128   ;;  %s970_s8 = smov 8   ;;  %462 = vst [vmem:[%s1154_s27 + $0x8] sm:$0xff] %v458_v55 }
 0x131   : > { %719 = dma.vmem_to_hbm [thread:$0]  (%p1082_p13), %s1158_s22, 512, %s1166_s6, %s471_s25, %s969_s10, %s969_s10, %s970_s8  }
 0x132   : > { %s466_s18 = scalar_lea.sflag [#allocation4], %s1117_s4  ;;  %s874_s11 = scalar_lea.vmem %s1168_s29, 512 }
 0x133   : > { %p875_p8 = scmp.ne.s32.totalorder %s1168_s29, %s874_s11  ;;  %s971_s26 = smov [#allocation7]  }
 0x134   : > { %s878_s30 = sshll.u32 %s971_s26, 4  ;;  %s879_s30 = int_to_ptr.vmem [resolvable:$false] %s878_s30 }
 0x135   : > { %p876_p12 = pnand %p875_p8, %p1082_p13  ;;  %s880_s20 = scalar_lea.vmem %s879_s30, 1024 }
 0x136   : > { %p881_p2 = scmp.lt.s32.totalorder %s1168_s29, %s879_s30  ;;  %p882_p3 = scmp.lt.s32.totalorder %s880_s20, %s874_s11 }
 0x137   : > { %p877_p0 = pneg %p876_p12 }
 0x138   : > { %p883_p5 = por %p882_p3, %p881_p2 }
 0x13a   : > { %p884_p7 = pnand %p883_p5, %p877_p0 }
 0x13c   : > { %887 = shalt.err (!%p884_p7)
}
 0x13d   : > { %s888_s22 = scalar_lea.hbm %s1175_s7, 512  ;;  %s892_s6 = scalar_lea.hbm %s1253_s2, 1024 }
 0x13e   : > { %p889_p4 = scmp.ne.s32.totalorder %s1175_s7, %s888_s22  ;;  %p893_p11 = scmp.lt.s32.totalorder %s1175_s7, %s1253_s2 }
 0x13f   : > { %p894_p10 = scmp.lt.s32.totalorder %s892_s6, %s888_s22 }
 0x140   : > { %p890_p6 = pnand %p889_p4, %p1082_p13 }
 0x141   : > { %p895_p1 = por %p894_p10, %p893_p11 }
 0x142   : > { %p891_p9 = pneg %p890_p6 }
 0x144   : > { %p896_p8 = pnand %p895_p1, %p891_p9 }
 0x146   : > { %899 = shalt.err (!%p896_p8)
}
 0x147   : > { %718 = dma.vmem_to_hbm [thread:$0]  (%p1082_p13), %s1168_s29, 512, %s1175_s7, %s466_s18, %s969_s10, %s969_s10, %s970_s8  }
 0x148 PF: > { %s521_s15 = sand.u32 1, %s942_s12   ;;  %p1270_p12 = scmp.ne.s32.totalorder %s1261_s23, 0 }
 0x149   : > { %p1271_p0 = scmp.ge.s32.totalorder %s962_s17, 2  ;;  %s522_s5 = scalar_lea.sflag [#allocation4], %s521_s15 }
 0x14b   : > { %p731_p2 = pnand %p1271_p0, %p1270_p12 }
 0x14d   : > { %p732_p3 = pneg %p731_p2 }
 0x14f   : > { %933 = dma.done.wait (%p732_p3), %s522_s5, 512  }
 0x150   : > { %935 = vsyncadd (%p732_p3), %s522_s5, 4294966784  ;;  %s531_s21 = scalar_lea.sflag [#allocation9], %s521_s15 }
 0x151   : > { %937 = dma.done.wait (%p732_p3), %s531_s21, 512  }
 0x152   : > { %939 = vsyncadd (%p732_p3), %s531_s21, 4294966784  ;;  %s24_s17 = sadd.s32 1, %s962_s17   ;;  %s1272_s12 = smov %s946_s13 }
 0x153   : > { %p21_p5 = scmp.ge.s32.totalorder %s24_s17, 4   ;;  %s1273_s13 = smov %s950_s14 }
 0x154   : > { %s1274_s14 = smov %s1091_s19  ;;  %s1275_s15 = smov %s958_s16 }
 0x155   : > { %s1276_s16 = smov %s1278_s28  ;;  %23 = sbr.rel (!%p21_p5) target bundleno = 9 (0x9), region = 96 }
 0x15a   :  { %536 = vsyncpa [#allocation3], 1 }
 0x15b   :  { %538 = vsyncpa [#allocation3 + $0x1], 1 }
 0x15c   :  { %539 = vsyncpa [#allocation6], 1 }
 0x15d   :  { %541 = vsyncpa [#allocation6 + $0x1], 1 }
 0x15e   :  { %542 = vsyncpa [#allocation4], 1 }
 0x15f   :  { %544 = vsyncpa [#allocation4 + $0x1], 1 }
 0x160   :  { %545 = vsyncpa [#allocation9], 1 }
 0x161   :  { %547 = vsyncpa [#allocation9 + $0x1], 1 }

</bundles_post_ra>
